<compile_context>
chip_gen: v7x
topology: tpu7x:2x2x1
jax: 0.10.0
libtpu: 0.0.40
codegen_flags: <defaults>
</compile_context>

<pallas_src>
import functools

import jax
import jax.numpy as jnp
from jax.experimental import pallas as pl
from jax.experimental.pallas import tpu as pltpu

NEG_SLOPE = 0.01          # PyTorch nn.LeakyReLU default
HID = 56                  # module hidden width
HID_PAD = 128             # fixed lane-dense hidden width inside the kernel
_SUBLANE = 8


def _round_up(x, m):
    return (x + m - 1) // m * m


def _leaky_relu(x):
    return jnp.where(x > 0, x, NEG_SLOPE * x)


def _make_kernel(obs_dim, act_dim, in_pad):
    """Fused 3-layer MLP kernel for the given static dimensions."""
    two_obs = 2 * obs_dim
    in_dim = two_obs + act_dim
    w2_row = in_pad
    b_row = in_pad + HID_PAD          # b1 at b_row, b2 at b_row + 1

    def kernel(co_ref, no_ref, ac_ref, w12_ref, w3_ref, o_ref):
        co = co_ref[...]
        no = no_ref[...]
        ac = ac_ref[...]

        # Layer 1: W1 split per input chunk -> no concatenated activation needed.
        # TODO(synk): fuse these three tiny-K dots into one K=in_pad dot via a small
        # VMEM staging buffer once output traffic no longer dominates.
        h1 = (
            jnp.dot(co, w12_ref[0:obs_dim, :], preferred_element_type=jnp.float32)
            + jnp.dot(no, w12_ref[obs_dim:two_obs, :], preferred_element_type=jnp.float32)
            + jnp.dot(ac, w12_ref[two_obs:in_dim, :], preferred_element_type=jnp.float32)
            + w12_ref[b_row:b_row + 1, :]
        )
        h1 = _leaky_relu(h1)

        # Layer 2: lane-dense 128x128 weight tile (padded rows/cols are exact zeros).
        h2 = _leaky_relu(
            jnp.dot(h1, w12_ref[w2_row:w2_row + HID_PAD, :],
                    preferred_element_type=jnp.float32)
            + w12_ref[b_row + 1:b_row + 2, :]
        )

        # Layer 3: output written at its true width (B, out_dim) — no padded lanes.
        out = (
            jnp.dot(h2, w3_ref[0:HID_PAD, :], preferred_element_type=jnp.float32)
            + w3_ref[HID_PAD:HID_PAD + 1, :]
        )
        o_ref[...] = out.astype(o_ref.dtype)

    return kernel


def pack_params(params, obs_dim, act_dim):
    """Pack (w1,b1,w2,b2,w3,b3) into two lane-dense f32 blobs.

    Weights are in (in_features, out_features) layout (PyTorch weights must be
    transposed before packing).

    blob12 (rows = in_pad + 128 + 8, lanes = 128):
      [0, in_dim)            : W1 rows grouped as [curr_obs | new_obs | action]
      [in_pad, in_pad+128)   : W2 (56x56 zero-padded to 128x128)
      row in_pad+128         : b1        row in_pad+129 : b2
    blob3 (rows = 128 + 8, lanes = out_dim):
      [0, 128)               : W3 (56 x out_dim, rows zero-padded to 128)
      row 128                : b3
    """
    w1, b1, w2, b2, w3, b3 = params
    in_dim = 2 * obs_dim + act_dim
    hid = w1.shape[1]
    out_dim = w3.shape[1]

    assert hid <= HID_PAD, "hidden_dim must fit the fixed 128-lane kernel width"
    assert w1.shape == (in_dim, hid), "w1 must be (in_dim, hidden)"
    assert w2.shape == (hid, hid), "w2 must be (hidden, hidden)"
    assert w3.shape == (hid, out_dim), "w3 must be (hidden, out_dim)"

    in_pad = _round_up(in_dim, _SUBLANE)

    rows12 = in_pad + HID_PAD + _SUBLANE
    blob12 = jnp.zeros((rows12, HID_PAD), jnp.float32)
    blob12 = blob12.at[:in_dim, :hid].set(w1.astype(jnp.float32))
    blob12 = blob12.at[in_pad:in_pad + hid, :hid].set(w2.astype(jnp.float32))
    b_row = in_pad + HID_PAD
    blob12 = blob12.at[b_row, :hid].set(jnp.reshape(b1, (-1,)).astype(jnp.float32))
    blob12 = blob12.at[b_row + 1, :hid].set(jnp.reshape(b2, (-1,)).astype(jnp.float32))

    rows3 = HID_PAD + _SUBLANE
    blob3 = jnp.zeros((rows3, out_dim), jnp.float32)
    blob3 = blob3.at[:hid, :].set(w3.astype(jnp.float32))
    blob3 = blob3.at[HID_PAD, :].set(jnp.reshape(b3, (-1,)).astype(jnp.float32))

    return blob12, blob3


@functools.partial(jax.jit, static_argnames=("block_rows",))
def richid_psi_forward(curr_obs, new_obs, action, blob12, blob3, block_rows=1024):
    """Pallas implementation of RichIDPsiModel.forward."""
    B, obs_dim = curr_obs.shape
    act_dim = action.shape[1]
    in_dim = 2 * obs_dim + act_dim
    in_pad = blob12.shape[0] - HID_PAD - _SUBLANE
    out_dim = blob3.shape[1]

    # Batch tile: aim for >= 2 grid blocks (megacore sharding on v7x) while keeping
    # the lane-padded, double-buffered VMEM footprint small on every generation
    # (tb=1024 -> a few MiB including 128-lane padding of the narrow inputs).
    tb = min(block_rows, _round_up(pl.cdiv(B, 2), _SUBLANE))
    if tb >= B:
        tb = B
    n_blocks = pl.cdiv(B, tb)

    kernel = _make_kernel(obs_dim, act_dim, in_pad)

    flops = 2 * B * (in_dim * HID_PAD + HID_PAD * HID_PAD + HID_PAD * out_dim)
    bytes_accessed = 4 * (curr_obs.size + new_obs.size + action.size
                          + blob12.size + blob3.size + B * out_dim)

    out = pl.pallas_call(
        kernel,
        out_shape=jax.ShapeDtypeStruct((B, out_dim), jnp.float32),
        grid=(n_blocks,),
        in_specs=[
            pl.BlockSpec((tb, obs_dim), lambda i: (i, 0)),
            pl.BlockSpec((tb, obs_dim), lambda i: (i, 0)),
            pl.BlockSpec((tb, act_dim), lambda i: (i, 0)),
            # Weight blobs are grid-invariant (index_map -> (0, 0)) so they stay
            # VMEM-resident across the batch loop.
            # TODO(synk): pin to a single buffer via pipeline_mode=pl.Buffered(1)
            # after verifying the Mosaic build accepts buffer_count=1.
            pl.BlockSpec(blob12.shape, lambda i: (0, 0)),
            pl.BlockSpec(blob3.shape, lambda i: (0, 0)),
        ],
        out_specs=pl.BlockSpec((tb, out_dim), lambda i: (i, 0)),
        compiler_params=pltpu.CompilerParams(
            dimension_semantics=("parallel",),
        ),
        cost_estimate=pl.CostEstimate(
            flops=flops, transcendentals=0, bytes_accessed=bytes_accessed),
    )(curr_obs, new_obs, action, blob12, blob3)

    return out


def init_params(key, obs_dim, act_dim, k, hidden_dim=HID):
    """Deterministic synthetic parameter init (shapes match the nn.Module)."""
    input_dim = 2 * obs_dim + act_dim
    output_dim = k * act_dim
    ks = jax.random.split(key, 6)

    def linear(kw, kb, fan_in, fan_out):
        bound = 1.0 / jnp.sqrt(fan_in)
        # stored as (in, out) so the kernel computes x @ W
        w = jax.random.uniform(kw, (fan_in, fan_out), jnp.float32, -bound, bound)
        b = jax.random.uniform(kb, (1, fan_out), jnp.float32, -bound, bound)
        return w, b

    w1, b1 = linear(ks[0], ks[1], input_dim, hidden_dim)
    w2, b2 = linear(ks[2], ks[3], hidden_dim, hidden_dim)
    w3, b3 = linear(ks[4], ks[5], hidden_dim, output_dim)
    return (w1, b1, w2, b2, w3, b3)


def reference_forward(curr_obs, new_obs, action, params):
    """Plain-JAX reference for correctness checking."""
    w1, b1, w2, b2, w3, b3 = params
    x = jnp.concatenate([curr_obs, new_obs, action], axis=1)
    h = jax.nn.leaky_relu(x @ w1 + b1, NEG_SLOPE)
    h = jax.nn.leaky_relu(h @ w2 + b2, NEG_SLOPE)
    return h @ w3 + b3


if __name__ == "__main__":
    # Small shapes consistent with the module's forward.
    k = 3
    obs_dim = 16
    act_dim = 4
    batch = 8

    key = jax.random.PRNGKey(0)
    k_params, k_co, k_no, k_a = jax.random.split(key, 4)

    params = init_params(k_params, obs_dim, act_dim, k)
    blob12, blob3 = pack_params(params, obs_dim, act_dim)

    curr_obs = jax.random.normal(k_co, (batch, obs_dim), jnp.float32)
    new_obs = jax.random.normal(k_no, (batch, obs_dim), jnp.float32)
    action = jax.random.normal(k_a, (batch, act_dim), jnp.float32)

    out = richid_psi_forward(curr_obs, new_obs, action, blob12, blob3)
    out = jax.block_until_ready(out)

    ref = reference_forward(curr_obs, new_obs, action, params)
    assert out.shape == (batch, k * act_dim)
    assert jnp.allclose(out, ref, atol=1e-5, rtol=1e-5), "mismatch vs JAX reference"

    print("KERNEL_OK")
</pallas_src>

<mosaic_0001>
module attributes {stable_mosaic.version = 11 : i64} {
  func.func @kernel(%arg0: i32, %arg1: memref<8x16xf32, #tpu.memory_space<vmem>>, %arg2: memref<8x16xf32, #tpu.memory_space<vmem>>, %arg3: memref<8x4xf32, #tpu.memory_space<vmem>>, %arg4: memref<176x128xf32, #tpu.memory_space<vmem>>, %arg5: memref<136x12xf32, #tpu.memory_space<vmem>>, %arg6: memref<8x12xf32, #tpu.memory_space<vmem>>) attributes {dimension_semantics = [#tpu.dimension_semantics<parallel>], iteration_bounds = array<i64: 1>, scalar_prefetch = 0 : i64, scratch_operands = 0 : i64, tpu.core_type = #tpu.core_type<tc>, window_params = [{transform_indices = @transform_0, window_bounds = array<i64: 8, 16>}, {transform_indices = @transform_1, window_bounds = array<i64: 8, 16>}, {transform_indices = @transform_2, window_bounds = array<i64: 8, 4>}, {pipeline_mode = #tpu.pipeline_mode<synchronous>, transform_indices = @transform_3, window_bounds = array<i64: 176, 128>}, {pipeline_mode = #tpu.pipeline_mode<synchronous>, transform_indices = @transform_4, window_bounds = array<i64: 136, 12>}, {transform_indices = @transform_5, window_bounds = array<i64: 8, 12>}]} {
    %c0 = arith.constant 0 : index
    %c0_0 = arith.constant 0 : index
    %0 = vector.load %arg1[%c0, %c0_0] : memref<8x16xf32, #tpu.memory_space<vmem>>, vector<8x16xf32>
    %c0_1 = arith.constant 0 : index
    %c0_2 = arith.constant 0 : index
    %1 = vector.load %arg2[%c0_1, %c0_2] : memref<8x16xf32, #tpu.memory_space<vmem>>, vector<8x16xf32>
    %c0_3 = arith.constant 0 : index
    %c0_4 = arith.constant 0 : index
    %2 = vector.load %arg3[%c0_3, %c0_4] : memref<8x4xf32, #tpu.memory_space<vmem>>, vector<8x4xf32>
    %c0_5 = arith.constant 0 : index
    %c0_6 = arith.constant 0 : index
    %3 = vector.load %arg4[%c0_5, %c0_6] : memref<176x128xf32, #tpu.memory_space<vmem>>, vector<16x128xf32>
    %cst = arith.constant dense<0.000000e+00> : vector<8x128xf32>
    %4 = tpu.matmul %0, %3, %cst {dimension_numbers = #tpu.dot_dimension_numbers<[1], [0], [0], [1], [0, 0, 1, 1], [], []>} : vector<8x16xf32>, vector<16x128xf32>, vector<8x128xf32> -> vector<8x128xf32>
    %c16 = arith.constant 16 : index
    %c0_7 = arith.constant 0 : index
    %5 = vector.load %arg4[%c16, %c0_7] : memref<176x128xf32, #tpu.memory_space<vmem>>, vector<16x128xf32>
    %cst_8 = arith.constant dense<0.000000e+00> : vector<8x128xf32>
    %6 = tpu.matmul %1, %5, %cst_8 {dimension_numbers = #tpu.dot_dimension_numbers<[1], [0], [0], [1], [0, 0, 1, 1], [], []>} : vector<8x16xf32>, vector<16x128xf32>, vector<8x128xf32> -> vector<8x128xf32>
    %7 = arith.addf %4, %6 : vector<8x128xf32>
    %c32 = arith.constant 32 : index
    %c0_9 = arith.constant 0 : index
    %8 = vector.load %arg4[%c32, %c0_9] : memref<176x128xf32, #tpu.memory_space<vmem>>, vector<4x128xf32>
    %cst_10 = arith.constant dense<0.000000e+00> : vector<8x128xf32>
    %9 = tpu.matmul %2, %8, %cst_10 {dimension_numbers = #tpu.dot_dimension_numbers<[1], [0], [0], [1], [0, 0, 1, 1], [], []>} : vector<8x4xf32>, vector<4x128xf32>, vector<8x128xf32> -> vector<8x128xf32>
    %10 = arith.addf %7, %9 : vector<8x128xf32>
    %c168 = arith.constant 168 : index
    %c0_11 = arith.constant 0 : index
    %11 = vector.load %arg4[%c168, %c0_11] : memref<176x128xf32, #tpu.memory_space<vmem>>, vector<1x128xf32>
    %12 = vector.broadcast %11 : vector<1x128xf32> to vector<8x128xf32>
    %13 = arith.addf %10, %12 : vector<8x128xf32>
    %cst_12 = arith.constant 0.000000e+00 : f32
    %14 = vector.broadcast %cst_12 : f32 to vector<8x128xf32>
    %15 = arith.cmpf ogt, %13, %14 : vector<8x128xf32>
    %cst_13 = arith.constant 0.00999999977 : f32
    %16 = vector.broadcast %cst_13 : f32 to vector<8x128xf32>
    %17 = arith.mulf %16, %13 : vector<8x128xf32>
    %18 = arith.select %15, %13, %17 : vector<8x128xi1>, vector<8x128xf32>
    %c40 = arith.constant 40 : index
    %c0_14 = arith.constant 0 : index
    %19 = vector.load %arg4[%c40, %c0_14] : memref<176x128xf32, #tpu.memory_space<vmem>>, vector<128x128xf32>
    %cst_15 = arith.constant dense<0.000000e+00> : vector<8x128xf32>
    %20 = tpu.matmul %18, %19, %cst_15 {dimension_numbers = #tpu.dot_dimension_numbers<[1], [0], [0], [1], [0, 0, 1, 1], [], []>} : vector<8x128xf32>, vector<128x128xf32>, vector<8x128xf32> -> vector<8x128xf32>
    %c169 = arith.constant 169 : index
    %c0_16 = arith.constant 0 : index
    %21 = vector.load %arg4[%c169, %c0_16] : memref<176x128xf32, #tpu.memory_space<vmem>>, vector<1x128xf32>
    %22 = vector.broadcast %21 : vector<1x128xf32> to vector<8x128xf32>
    %23 = arith.addf %20, %22 : vector<8x128xf32>
    %cst_17 = arith.constant 0.000000e+00 : f32
    %24 = vector.broadcast %cst_17 : f32 to vector<8x128xf32>
    %25 = arith.cmpf ogt, %23, %24 : vector<8x128xf32>
    %cst_18 = arith.constant 0.00999999977 : f32
    %26 = vector.broadcast %cst_18 : f32 to vector<8x128xf32>
    %27 = arith.mulf %26, %23 : vector<8x128xf32>
    %28 = arith.select %25, %23, %27 : vector<8x128xi1>, vector<8x128xf32>
    %c0_19 = arith.constant 0 : index
    %c0_20 = arith.constant 0 : index
    %29 = vector.load %arg5[%c0_19, %c0_20] : memref<136x12xf32, #tpu.memory_space<vmem>>, vector<128x12xf32>
    %cst_21 = arith.constant dense<0.000000e+00> : vector<8x12xf32>
    %30 = tpu.matmul %28, %29, %cst_21 {dimension_numbers = #tpu.dot_dimension_numbers<[1], [0], [0], [1], [0, 0, 1, 1], [], []>} : vector<8x128xf32>, vector<128x12xf32>, vector<8x12xf32> -> vector<8x12xf32>
    %c128 = arith.constant 128 : index
    %c0_22 = arith.constant 0 : index
    %31 = vector.load %arg5[%c128, %c0_22] : memref<136x12xf32, #tpu.memory_space<vmem>>, vector<1x12xf32>
    %32 = vector.broadcast %31 : vector<1x12xf32> to vector<8x12xf32>
    %33 = arith.addf %30, %32 : vector<8x12xf32>
    %c0_23 = arith.constant 0 : index
    %c0_24 = arith.constant 0 : index
    %34 = vector.load %arg6[%c0_23, %c0_24] : memref<8x12xf32, #tpu.memory_space<vmem>>, vector<8x12xf32>
    tpu.vector_store %arg6[%c0_23, %c0_24], %33 {strides = array<i32>} : memref<8x12xf32, #tpu.memory_space<vmem>>, vector<8x12xf32>,
    return
  }
  func.func @transform_0(%arg0: i32) -> (i32, i32) {
    %c0_i32 = arith.constant 0 : i32
    %c0_i32_0 = arith.constant 0 : i32
    return %arg0, %c0_i32 : i32, i32
  }
  func.func @transform_1(%arg0: i32) -> (i32, i32) {
    %c0_i32 = arith.constant 0 : i32
    %c0_i32_0 = arith.constant 0 : i32
    return %arg0, %c0_i32 : i32, i32
  }
  func.func @transform_2(%arg0: i32) -> (i32, i32) {
    %c0_i32 = arith.constant 0 : i32
    %c0_i32_0 = arith.constant 0 : i32
    return %arg0, %c0_i32 : i32, i32
  }
  func.func @transform_3(%arg0: i32) -> (i32, i32) {
    %c0_i32 = arith.constant 0 : i32
    %c0_i32_0 = arith.constant 0 : i32
    %c0_i32_1 = arith.constant 0 : i32
    return %c0_i32, %c0_i32_0 : i32, i32
  }
  func.func @transform_4(%arg0: i32) -> (i32, i32) {
    %c0_i32 = arith.constant 0 : i32
    %c0_i32_0 = arith.constant 0 : i32
    %c0_i32_1 = arith.constant 0 : i32
    return %c0_i32, %c0_i32_0 : i32, i32
  }
  func.func @transform_5(%arg0: i32) -> (i32, i32) {
    %c0_i32 = arith.constant 0 : i32
    %c0_i32_0 = arith.constant 0 : i32
    return %arg0, %c0_i32 : i32, i32
  }
}

</mosaic_0001>

<bundles_post_ra>
// kernel: richid_psi_forward.1
= control target key start
LH: loop header
LB: loop body
LE: loop exit
PB: predicated region body
PF: predicated region fallthrough
CT: control target
= control target key end

     0   :  { %10 = vsyncpa [#allocation3], 0  ;;  %s931_s0 = inlined_call_operand.vmem [shape: f32[8,16], index: 0, kind: input, shape index: {}]   ;;  %s932_s1 = inlined_call_operand.hbm [shape: f32[8,16], index: 1, kind: input, shape index: {}]   ;;  %s933_s2 = inlined_call_operand.vmem [shape: f32[8,4], index: 2, kind: input, shape index: {}]   ;;  %s934_s3 = inlined_call_operand.vmem [shape: f32[176,128], index: 3, kind: input, shape index: {}]   ;;  %s935_s4 = inlined_call_operand.vmem [shape: f32[136,12], index: 4, kind: input, shape index: {}]   ;;  %s936_s5 = inlined_call_operand.hbm [shape: f32[8,12], index: 5, kind: output, shape index: {}]  }
   0x1   :  { %11 = vsyncpa [#allocation4], 0  ;;  %s723_s18 = smov [#allocation2]   ;;  %s675_s22 = scalar_lea.hbm %s932_s1, 128 }
   0x2   :  { %s20_s19 = sshll.u32 %s723_s18, 4  ;;  %p676_p0 = scmp.ne.s32.totalorder %s932_s1, %s675_s22  ;;  %s21_s19 = int_to_ptr.vmem [resolvable:$true] %s20_s19 }
   0x3   :  { %p679_p1 = scmp.lt.u32.totalorder %s675_s22, %s932_s1 }
   0x5   :  { %p681_p2 = pnand %p679_p1, %p676_p0 }
   0x7   :  { %684 = shalt.err (!%p681_p2)
}
   0x8   :  { %s685_s27 = scalar_lea.vmem %s21_s19, 128  ;;  %p690_p4 = scmp.lt.s32.totalorder %s21_s19, %s21_s19 }
   0x9   :  { %p686_p3 = scmp.ne.s32.totalorder %s21_s19, %s685_s27  ;;  %p691_p5 = scmp.lt.s32.totalorder %s685_s27, %s685_s27 }
   0xb   :  { %p692_p6 = por %p691_p5, %p690_p4 }
   0xd   :  { %p693_p7 = pnand %p692_p6, %p686_p3 }
   0xf   :  { %696 = shalt.err (!%p693_p7)
}
  0x10   :  { %23 = dma.hbm_to_vmem [thread:$0]  %s932_s1, 128, %s21_s19, [#allocation3]  }
  0x11   :  { %719 = dma.done.wait [#allocation3], 128  }
  0x12   :  { %720 = vsyncadd [#allocation3], 4294967168  ;;  %v724_v0 = vmov 0.0|0.0   ;;  %vm725_vm0 = vmmov 0   ;;  %v726_v1 = vmov 0.0   ;;  %v38_v2 = vld [vmem:[%s934_s3 + $0x10] sm:$0xff] }
  0x13   :  { %616 = vmatprep.subr.bf16.mxu0 %v724_v0  ;;  %619 = vmatprep.subr.bf16.mxu1 %v724_v0  ;;  %v39_v3 = vld [vmem:[%s934_s3 + $0x18] sm:$0xff]  ;;  %v36_v4 = vld [vmem:[%s934_s3] sm:$0xff]  ;;  %v37_v6 = vld [vmem:[%s934_s3 + $0x8] sm:$0xff]  ;;  %vm40_vm1 = vcmask 130048   ;;  %vm192_vm2 = vcmask 1043456   ;;  %vm188_vm3 = vcmask 31744  }
  0x14   :  { %531 = vmatprep.mubr.msk.f32.mxu0 %vm725_vm0, %v726_v1  ;;  %538 = vmatprep.mubr.msk.f32.mxu1 %vm725_vm0, %v726_v1  ;;  %v617_v5 = vpack.c.bf16 %v39_v3, %v38_v2  ;;  %v620_v7 = vpack.c.bf16 %v37_v6, %v36_v4  ;;  %v276_v8 = vld [vmem:[%s934_s3 + $0x28] sm:$0xff]  ;;  %v34_v9 = vld [vmem:[#allocation2] sm:$0xff]  ;;  %v277_v10 = vld [vmem:[%s934_s3 + $0x30] sm:$0xff]  ;;  %s727_s30 = smov [#allocation5]   ;;  %vm461_vm6 = vcmask 97280  }
  0x15   :  { %v33_v11 = vld [vmem:[%s931_s0] sm:$0xff]  ;;  %v623_v13 = vpack.c.bf16 %v277_v10, %v276_v8  ;;  %v278_v14 = vld [vmem:[%s934_s3 + $0x38] sm:$0xff]  ;;  %v280_v18 = vld [vmem:[%s934_s3 + $0x48] sm:$0xff]  ;;  %s469_s6 = sshll.u32 %s727_s30, 4  ;;  %s470_s6 = int_to_ptr.vmem [resolvable:$true] %s469_s6 }
  0x16   :  { %618 = vmatpush3.bf16.msra.mxu0 %v617_v5  ;;  %621 = vmatpush3.bf16.msra.mxu1 %v620_v7  ;;  %v187_v12 = vld [vmem:[%s934_s3 + $0x20] sm:$0xf]  ;;  %v281_v19 = vld [vmem:[%s934_s3 + $0x50] sm:$0xff]  ;;  %v282_v21 = vld [vmem:[%s934_s3 + $0x58] sm:$0xff]  ;;  %p702_p9 = scmp.lt.s32.totalorder %s470_s6, %s470_s6 }
  0x17   :  { %541 = vmatprep.subr.mxu0 %v726_v1  ;;  %622 = vmatprep.subr.bf16.mxu1 %v724_v0  ;;  %v279_v15 = vld [vmem:[%s934_s3 + $0x40] sm:$0xff]  ;;  %v629_v20 = vpack.c.bf16 %v281_v19, %v280_v18  ;;  %v284_v24 = vld [vmem:[%s934_s3 + $0x68] sm:$0xff]  ;;  %v285_v25 = vld [vmem:[%s934_s3 + $0x70] sm:$0xff] }
  0x18   :  { %v35_v16 = vld [vmem:[%s933_s2] sm:$0xff]  ;;  %v626_v17 = vpack.c.bf16 %v279_v15, %v278_v14  ;;  %v635_v26 = vpack.c.bf16 %v285_v25, %v284_v24  ;;  %v286_v27 = vld [vmem:[%s934_s3 + $0x78] sm:$0xff]  ;;  %v288_v30 = vld [vmem:[%s934_s3 + $0x88] sm:$0xff] }
  0x19   :  { %532 = vmatmul.mubr.msk.f32.vlgmr.msra.gmra.mrb[0].mxu0 %vm40_vm1, %v34_v9  ;;  %539 = vmatmul.mubr.msk.f32.vlgmr.msra.gmra.mrb[0].mxu1 %vm40_vm1, %v33_v11  ;;  %v283_v22 = vld [vmem:[%s934_s3 + $0x60] sm:$0xff]  ;;  %v289_v31 = vld [vmem:[%s934_s3 + $0x90] sm:$0xff]  ;;  %v290_v33 = vld [vmem:[%s934_s3 + $0x98] sm:$0xff] }
  0x1a   :  { %542 = vmatpush3.msk.msra.mxu0 %vm192_vm2, %v187_v12  ;;  %543 = vmatprep.mubr.msk.f32.mxu0 %vm725_vm0, %v726_v1  ;;  %v632_v23 = vpack.c.bf16 %v283_v22, %v282_v21  ;;  %v287_v28 = vld [vmem:[%s934_s3 + $0x80] sm:$0xff]  ;;  %v641_v32 = vpack.c.bf16 %v289_v31, %v288_v30  ;;  %v371_v37 = vld [vmem:[%s935_s4 + $0x8] sm:$0xff]  ;;  %v372_v38 = vld [vmem:[%s935_s4 + $0x10] sm:$0xff] }
  0x1b   :  { %624 = vmatpush3.bf16.msra.mxu1 %v623_v13  ;;  %578 = vmatprep.mubr.msk.f32.mxu1 %vm725_vm0, %v726_v1  ;;  %v638_v29 = vpack.c.bf16 %v287_v28, %v286_v27  ;;  %v291_v34 = vld [vmem:[%s934_s3 + $0xa0] sm:$0xff]  ;;  %v373_v40 = vld [vmem:[%s935_s4 + $0x18] sm:$0xff]  ;;  %v375_v43 = vld [vmem:[%s935_s4 + $0x28] sm:$0xff] }
  0x1c   :  { %625 = vmatprep.subr.bf16.mxu1 %v724_v0  ;;  %646 = vmatprep.subr.bf16.mxu0 %v724_v0  ;;  %v644_v35 = vpack.c.bf16 %v291_v34, %v290_v33  ;;  %v370_v36 = vld [vmem:[%s935_s4] sm:$0xff]  ;;  %v650_v41 = vpack.c.bf16 %v373_v40, %v372_v38  ;;  %v376_v45 = vld [vmem:[%s935_s4 + $0x30] sm:$0xff]  ;;  %v377_v46 = vld [vmem:[%s935_s4 + $0x38] sm:$0xff] }
  0x1d   :  { %544 = vmatmul.mubr.msk.f32.vlgmr.msra.gmra.mrb[2].mxu0 %vm188_vm3, %v35_v16  ;;  %v647_v39 = vpack.c.bf16 %v371_v37, %v370_v36  ;;  %v374_v42 = vld [vmem:[%s935_s4 + $0x20] sm:$0xff]  ;;  %v656_v47 = vpack.c.bf16 %v377_v46, %v376_v45  ;;  %v379_v49 = vld [vmem:[%s935_s4 + $0x48] sm:$0xff]  ;;  %v380_v51 = vld [vmem:[%s935_s4 + $0x50] sm:$0xff] }
  0x1e   :  { %613 = vmatprep.mubr.msk.f32.mxu0 %vm725_vm0, %v726_v1  ;;  %v653_v44 = vpack.c.bf16 %v375_v43, %v374_v42  ;;  %v378_v48 = vld [vmem:[%s935_s4 + $0x40] sm:$0xff]  ;;  %v381_v52 = vld [vmem:[%s935_s4 + $0x58] sm:$0xff]  ;;  %v383_v55 = vld [vmem:[%s935_s4 + $0x68] sm:$0xff] }
  0x1f   :  { %627 = vmatpush3.bf16.msra.mxu1 %v626_v17  ;;  %648 = vmatpush3.bf16.msra.mxu0 %v647_v39  ;;  %v659_v50 = vpack.c.bf16 %v379_v49, %v378_v48  ;;  %v662_v53 = vpack.c.bf16 %v381_v52, %v380_v51  ;;  %v382_v54 = vld [vmem:[%s935_s4 + $0x60] sm:$0xff]  ;;  %v482_v63 = vld [vmem:[%s934_s3 + $0xa8] ss:$0 sm:$0xff]  ;;  %v385_v6 = vld [vmem:[%s935_s4 + $0x78] sm:$0xff] }
  0x20   :  { %628 = vmatprep.subr.bf16.mxu1 %v724_v0  ;;  %649 = vmatprep.subr.bf16.mxu0 %v724_v0  ;;  %v665_v56 = vpack.c.bf16 %v383_v55, %v382_v54  ;;  %v483_v8 = vld [vmem:[%s934_s3 + $0xa9] ss:$0 sm:$0xff]  ;;  %v484_v14 = vld [vmem:[%s935_s4 + $0x80] ss:$0 sm:$0xff]  ;;  %s697_s3 = scalar_lea.vmem %s470_s6, 128 }
  0x21   :  { %p698_p8 = scmp.ne.s32.totalorder %s470_s6, %s697_s3  ;;  %p703_p10 = scmp.lt.s32.totalorder %s697_s3, %s697_s3 }
  0x23   :  { %630 = vmatpush3.bf16.msra.mxu1 %v629_v20  ;;  %651 = vmatpush3.bf16.msra.mxu0 %v650_v41  ;;  %p704_p11 = por %p703_p10, %p702_p9 }
  0x24   :  { %631 = vmatprep.subr.bf16.mxu1 %v724_v0  ;;  %652 = vmatprep.subr.bf16.mxu0 %v724_v0 }
  0x25   :  { %p705_p12 = pnand %p704_p11, %p698_p8 }
  0x27   :  { %633 = vmatpush3.bf16.msra.mxu1 %v632_v23  ;;  %654 = vmatpush3.bf16.msra.mxu0 %v653_v44 }
  0x28   :  { %634 = vmatprep.subr.bf16.mxu1 %v724_v0  ;;  %655 = vmatprep.subr.bf16.mxu0 %v724_v0 }
  0x2b   :  { %636 = vmatpush3.bf16.msra.mxu1 %v635_v26  ;;  %657 = vmatpush3.bf16.msra.mxu0 %v656_v47 }
  0x2c   :  { %637 = vmatprep.subr.bf16.mxu1 %v724_v0  ;;  %658 = vmatprep.subr.bf16.mxu0 %v724_v0 }
  0x2f   :  { %639 = vmatpush3.bf16.msra.mxu1 %v638_v29  ;;  %660 = vmatpush3.bf16.msra.mxu0 %v659_v50 }
  0x30   :  { %640 = vmatprep.subr.bf16.mxu1 %v724_v0  ;;  %661 = vmatprep.subr.bf16.mxu0 %v724_v0 }
  0x33   :  { %642 = vmatpush3.bf16.msra.mxu1 %v641_v32  ;;  %663 = vmatpush3.bf16.msra.mxu0 %v662_v53 }
  0x34   :  { %643 = vmatprep.subr.bf16.mxu1 %v724_v0  ;;  %664 = vmatprep.subr.bf16.mxu0 %v724_v0 }
  0x37   :  { %645 = vmatpush3.bf16.msra.mxu1 %v644_v35  ;;  %666 = vmatpush3.bf16.msra.mxu0 %v665_v56 }
  0x38   :  { %667 = vmatprep.subr.bf16.mxu0 %v724_v0  ;;  %v384_v0 = vld [vmem:[%s935_s4 + $0x70] sm:$0xff] }
  0x39   :  { %v668_v7 = vpack.c.bf16 %v385_v6, %v384_v0 }
  0x3b   :  { %669 = vmatpush3.bf16.msra.mxu0 %v668_v7 }
  0xec   :  { %v110_v57 = vpop.f32.mrb[0].mxu0  ;;  %v183_v59 = vpop.f32.mrb[0].mxu1 }
  0xed   :  { %v533_v58 = vpop.f32.mrb[1].mxu0  ;;  %v184_v60 = vadd.f32 %v183_v59, %v110_v57  ;;  %v540_v61 = vpop.f32.mrb[1].mxu1 }
  0xf0   :  { %v262_v62 = vpop.f32.mrb[2].mxu0 }
  0xf1   :  { %v266_v1 = vadd.f32 %v262_v62, %v184_v60  ;;  %v545_v2 = vpop.f32.mrb[3].mxu0 }
  0xf3   :  { %v272_v3 = vadd.f32 %v482_v63, %v266_v1 }
  0xf5   :  { %v274_v4 = vmul.f32 0.01, %v272_v3  ;;  %vm273_vm4 = vcmp.gt.f32.partialorder %v272_v3, 0.0 }
  0xf7   :  { %v275_v5 = vsel %vm273_vm4, %v272_v3, %v274_v4 }
  0xf8   :  { %579 = vmatmul.mubr.f32.vlgmr.msra.gmra.mrb[2].mxu1 %v275_v5 }
 0x1cb   :  { %v363_v9 = vpop.f32.mrb[2].mxu1 }
 0x1cc   :  { %v364_v10 = vadd.f32 %v483_v8, %v363_v9  ;;  %v580_v11 = vpop.f32.mrb[3].mxu1 }
 0x1ce   :  { %vm367_vm5 = vcmp.gt.f32.partialorder %v364_v10, 0.0  ;;  %v368_v12 = vmul.f32 0.01, %v364_v10 }
 0x1d0   :  { %v369_v13 = vsel %vm367_vm5, %v364_v10, %v368_v12 }
 0x1d1   :  { %614 = vmatmul.mubr.f32.vlgmr.msra.gmra.mrb[4].mxu0 %v369_v13 }
 0x2a4   :  { %v457_v15 = vpop.f32.mrb[4].mxu0 }
 0x2a5   :  { %v458_v16 = vadd.f32 %v484_v14, %v457_v15  ;;  %v615_v17 = vpop.f32.mrb[5].mxu0 }
 0x2a7   :  { %462 = vst.msk [vmem:[#allocation5] sm:$0xff] %vm461_vm6, %v458_v16 }
 0x2a8   :  { %708 = shalt.err (!%p705_p12)
}
 0x2a9   :  { %s709_s1 = scalar_lea.hbm %s936_s5, 128 }
 0x2aa   :  { %p710_p13 = scmp.ne.s32.totalorder %s936_s5, %s709_s1  ;;  %p713_p0 = scmp.lt.u32.totalorder %s709_s1, %s936_s5 }
 0x2ac   :  { %p715_p1 = pnand %p713_p0, %p710_p13 }
 0x2ae   :  { %718 = shalt.err (!%p715_p1)
}
 0x2af   :  { %472 = dma.vmem_to_hbm [thread:$0]  %s470_s6, 128, %s936_s5, [#allocation4]  }
 0x2b0   :  { %721 = dma.done.wait [#allocation4], 128  }
 0x2b1   :  { %722 = vsyncadd [#allocation4], 4294967168 }
 0x2b2   :  { %476 = vsyncpa [#allocation3], 1 }
 0x2b3   :  { %477 = vsyncpa [#allocation4], 1 }

</bundles_post_ra>
